<compile_context>
chip_gen: v5e
topology: v5e:2x2
jax: 0.10.0
libtpu: 0.0.40
codegen_flags: <defaults>
</compile_context>

<pallas_src>
import functools

import jax
import jax.numpy as jnp
from jax.experimental import pallas as pl
from jax.experimental.pallas import tpu as pltpu


_VMEM_LIMIT = 32 * 1024 * 1024  # explicit budget; plenty of headroom on v7x (64 MiB)


def _round_up(v, m):
    return ((v + m - 1) // m) * m


def _pick_tile(n_pad, max_tile=512):
    """Largest multiple of 128 <= max_tile that divides n_pad."""
    t = max_tile
    while n_pad % t != 0:
        t -= 128
    return t


# --------------------------- Kernel A: GCN propagation ----------------------

def _gcn_prop_kernel(a_ref, xw_ref, b_ref, h_ref, acc_ref):
    k = pl.program_id(1)

    @pl.when(k == 0)
    def _():
        acc_ref[...] = jnp.zeros_like(acc_ref)

    # A_hat[i-block, k-block] @ XW[k-block]  (bf16/f32 operands, f32 accumulate)
    acc_ref[...] += jnp.dot(a_ref[...], xw_ref[...],
                            preferred_element_type=jnp.float32)

    @pl.when(k == pl.num_programs(1) - 1)
    def _():
        h = jnp.maximum(acc_ref[...] + b_ref[...], 0.0)  # bias + ReLU in f32
        # TODO(synk): training-mode dropout would need pltpu.prng_seed/prng_random_bits;
        # the module runs in eval mode here, where dropout is the identity.
        h_ref[...] = h.astype(h_ref.dtype)


def _gcn_propagate(a_hat, xw, b2d, *, out_dtype, tm, tk):
    n_pad = a_hat.shape[0]
    f = xw.shape[1]
    return pl.pallas_call(
        _gcn_prop_kernel,
        out_shape=jax.ShapeDtypeStruct((n_pad, f), out_dtype),
        grid_spec=pltpu.PrefetchScalarGridSpec(
            num_scalar_prefetch=0,
            grid=(n_pad // tm, n_pad // tk),
            in_specs=[
                pl.BlockSpec((tm, tk), lambda i, k: (i, k)),   # A_hat tile
                pl.BlockSpec((tk, f), lambda i, k: (k, 0)),    # XW k-slab
                pl.BlockSpec((1, f), lambda i, k: (0, 0)),     # bias row
            ],
            out_specs=pl.BlockSpec((tm, f), lambda i, k: (i, 0)),
            scratch_shapes=[pltpu.VMEM((tm, f), jnp.float32)],
        ),
        compiler_params=pltpu.CompilerParams(
            dimension_semantics=("parallel", "arbitrary"),
            vmem_limit_bytes=_VMEM_LIMIT),
    )(a_hat, xw, b2d)


# --------------------------- Kernel B: Gram (H @ H^T) -----------------------

def _gram_kernel(hi_ref, hj_ref, o_ref):
    # Contract the last dim of BOTH operands: MXU consumes H directly,
    # no materialized transpose of H.
    o_ref[...] = jax.lax.dot_general(
        hi_ref[...], hj_ref[...],
        dimension_numbers=(((1,), (1,)), ((), ())),
        preferred_element_type=jnp.float32).astype(o_ref.dtype)


def _gram(h, *, tm, tn):
    n_pad, f = h.shape
    return pl.pallas_call(
        _gram_kernel,
        out_shape=jax.ShapeDtypeStruct((n_pad, n_pad), jnp.float32),
        grid_spec=pltpu.PrefetchScalarGridSpec(
            num_scalar_prefetch=0,
            grid=(n_pad // tm, n_pad // tn),
            in_specs=[
                pl.BlockSpec((tm, f), lambda i, j: (i, 0)),    # H[i-block]
                pl.BlockSpec((tn, f), lambda i, j: (j, 0)),    # H[j-block]
            ],
            out_specs=pl.BlockSpec((tm, tn), lambda i, j: (i, j)),
        ),
        compiler_params=pltpu.CompilerParams(
            dimension_semantics=("parallel", "parallel"),
            vmem_limit_bytes=_VMEM_LIMIT),
    )(h, h)


# --------------------------- Glue: GCN normalization ------------------------

def gcn_norm_dense(edge_index, edge_weight, num_nodes):
    """Dense normalized adjacency matching PyG GCNConv gcn_norm.

    A[src, dst] = w ; add self loops (weight 1) ; deg over target index ;
    A_hat[dst, src] = deg^-1/2[dst] * A[src, dst] * deg^-1/2[src].
    NOTE: dense O(N^2) path; large sparse graphs should use a scalar-prefetch
    gather SpMM instead.
    """
    src, dst = edge_index[0], edge_index[1]
    a = jnp.zeros((num_nodes, num_nodes), jnp.float32).at[src, dst].add(edge_weight)
    a = a + jnp.eye(num_nodes, dtype=jnp.float32)          # self loops
    deg = a.sum(axis=0)
    d_inv_sqrt = jnp.where(deg > 0, 1.0 / jnp.sqrt(deg), 0.0)
    return d_inv_sqrt[:, None] * a.T * d_inv_sqrt[None, :]


# --------------------------- Full forward pass ------------------------------

@functools.partial(jax.jit, static_argnames=("compute_dtype", "max_tile"))
def structure_decoder(x, edge_index, edge_weight, w, b,
                      compute_dtype=jnp.bfloat16, max_tile=512):
    n, nhid = x.shape

    a_hat = gcn_norm_dense(edge_index, edge_weight, n)

    # Feature transform once (K = nhid is far below MXU native width).
    xw = jnp.dot(x.astype(jnp.float32), w.astype(jnp.float32),
                 preferred_element_type=jnp.float32)

    # Lane-dense padding: multiples of 128 everywhere; tile divides padded N.
    n_pad = _round_up(n, 128)
    t = _pick_tile(n_pad, max_tile)
    f_pad = _round_up(nhid, 128)

    a_p = jnp.zeros((n_pad, n_pad), compute_dtype).at[:n, :n].set(
        a_hat.astype(compute_dtype))
    xw_p = jnp.zeros((n_pad, f_pad), compute_dtype).at[:n, :nhid].set(
        xw.astype(compute_dtype))
    b_p = jnp.zeros((1, f_pad), jnp.float32).at[0, :nhid].set(
        b.astype(jnp.float32))

    h = _gcn_propagate(a_p, xw_p, b_p, out_dtype=compute_dtype, tm=t, tk=t)
    out = _gram(h, tm=t, tn=t)
    return out[:n, :n]


if __name__ == "__main__":
    key = jax.random.PRNGKey(0)
    k_x, k_w, k_b, k_e, k_o = jax.random.split(key, 5)

    num_nodes = 16
    nhid = 32
    num_edges = 40

    # Node features (e.g. output of the shared encoder): (N, nhid)
    x = jax.random.normal(k_x, (num_nodes, nhid), dtype=jnp.float32)

    # Deterministic GCNConv parameters (glorot-ish scale).
    w = jax.random.normal(k_w, (nhid, nhid), dtype=jnp.float32) / jnp.sqrt(nhid)
    b = jax.random.normal(k_b, (nhid,), dtype=jnp.float32) * 0.01

    # Random undirected edge list (no self loops), unit weights.
    src = jax.random.randint(k_e, (num_edges,), 0, num_nodes)
    dst = (src + 1 + jax.random.randint(k_o, (num_edges,), 0, num_nodes - 1)) % num_nodes
    edge_index = jnp.stack([jnp.concatenate([src, dst]),
                            jnp.concatenate([dst, src])], axis=0)
    edge_weight = jnp.ones((2 * num_edges,), jnp.float32)

    # Pure-JAX f32 reference.
    a_hat = gcn_norm_dense(edge_index, edge_weight, num_nodes)
    h_ref = jnp.maximum(a_hat @ (x @ w) + b[None, :], 0.0)
    ref = h_ref @ h_ref.T

    # Exact-precision path (f32 MXU operands).
    out_f32 = jax.block_until_ready(
        structure_decoder(x, edge_index, edge_weight, w, b,
                          compute_dtype=jnp.float32))
    assert out_f32.shape == (num_nodes, num_nodes)
    assert jnp.allclose(out_f32, ref, atol=1e-3, rtol=1e-3), \
        float(jnp.max(jnp.abs(out_f32 - ref)))

    # Performance path (bf16 MXU operands, f32 accumulation).
    out_bf16 = jax.block_until_ready(
        structure_decoder(x, edge_index, edge_weight, w, b))
    assert out_bf16.shape == (num_nodes, num_nodes)
    assert jnp.allclose(out_bf16, ref, atol=0.5, rtol=5e-2), \
        float(jnp.max(jnp.abs(out_bf16 - ref)))

    print("KERNEL_OK")
</pallas_src>

<mosaic_0001>
module attributes {stable_mosaic.version = 11 : i64} {
  func.func @_gram_kernel(%arg0: i32, %arg1: i32, %arg2: memref<128x128xf32, #tpu.memory_space<vmem>>, %arg3: memref<128x128xf32, #tpu.memory_space<vmem>>, %arg4: memref<128x128xf32, #tpu.memory_space<vmem>>) attributes {dimension_semantics = [#tpu.dimension_semantics<parallel>, #tpu.dimension_semantics<parallel>], iteration_bounds = array<i64: 1, 1>, scalar_prefetch = 0 : i64, scratch_operands = 0 : i64, tpu.core_type = #tpu.core_type<tc>, window_params = [{transform_indices = @transform_0, window_bounds = array<i64: 128, 128>}, {transform_indices = @transform_1, window_bounds = array<i64: 128, 128>}, {transform_indices = @transform_2, window_bounds = array<i64: 128, 128>}]} {
    %c0 = arith.constant 0 : index
    %c0_0 = arith.constant 0 : index
    %0 = vector.load %arg2[%c0, %c0_0] : memref<128x128xf32, #tpu.memory_space<vmem>>, vector<128x128xf32>
    %c0_1 = arith.constant 0 : index
    %c0_2 = arith.constant 0 : index
    %1 = vector.load %arg3[%c0_1, %c0_2] : memref<128x128xf32, #tpu.memory_space<vmem>>, vector<128x128xf32>
    %cst = arith.constant dense<0.000000e+00> : vector<128x128xf32>
    %2 = tpu.matmul %0, %1, %cst {dimension_numbers = #tpu.dot_dimension_numbers<[1], [1], [0], [0], [0, 0, 1, 0], [], []>} : vector<128x128xf32>, vector<128x128xf32>, vector<128x128xf32> -> vector<128x128xf32>
    %c0_3 = arith.constant 0 : index
    %c0_4 = arith.constant 0 : index
    %3 = vector.load %arg4[%c0_3, %c0_4] : memref<128x128xf32, #tpu.memory_space<vmem>>, vector<128x128xf32>
    tpu.vector_store %arg4[%c0_3, %c0_4], %2 {strides = array<i32>} : memref<128x128xf32, #tpu.memory_space<vmem>>, vector<128x128xf32>,
    return
  }
  func.func @transform_0(%arg0: i32, %arg1: i32) -> (i32, i32) {
    %c0_i32 = arith.constant 0 : i32
    %c0_i32_0 = arith.constant 0 : i32
    return %arg0, %c0_i32 : i32, i32
  }
  func.func @transform_1(%arg0: i32, %arg1: i32) -> (i32, i32) {
    %c0_i32 = arith.constant 0 : i32
    %c0_i32_0 = arith.constant 0 : i32
    return %arg1, %c0_i32 : i32, i32
  }
  func.func @transform_2(%arg0: i32, %arg1: i32) -> (i32, i32) {
    %c0_i32 = arith.constant 0 : i32
    return %arg0, %arg1 : i32, i32
  }
}

module attributes {stable_mosaic.version = 11 : i64} {
  func.func @_gcn_prop_kernel(%arg0: i32, %arg1: i32, %arg2: memref<128x128xf32, #tpu.memory_space<vmem>>, %arg3: memref<128x128xf32, #tpu.memory_space<vmem>>, %arg4: memref<1x128xf32, #tpu.memory_space<vmem>>, %arg5: memref<128x128xf32, #tpu.memory_space<vmem>>, %arg6: memref<128x128xf32, #tpu.memory_space<vmem>>) attributes {dimension_semantics = [#tpu.dimension_semantics<parallel>, #tpu.dimension_semantics<arbitrary>], iteration_bounds = array<i64: 1, 1>, scalar_prefetch = 0 : i64, scratch_operands = 1 : i64, tpu.core_type = #tpu.core_type<tc>, window_params = [{transform_indices = @transform_0, window_bounds = array<i64: 128, 128>}, {transform_indices = @transform_1, window_bounds = array<i64: 128, 128>}, {pipeline_mode = #tpu.pipeline_mode<synchronous>, transform_indices = @transform_2, window_bounds = array<i64: 1, 128>}, {transform_indices = @transform_3, window_bounds = array<i64: 128, 128>}]} {
    %c0_i32 = arith.constant 0 : i32
    %0 = arith.cmpi eq, %arg1, %c0_i32 : i32
    %1 = arith.extui %0 : i1 to i32
    %c0_i32_0 = arith.constant 0 : i32
    %2 = arith.cmpi ne, %1, %c0_i32_0 : i32
    scf.if %2 {
      %cst_10 = arith.constant 0.000000e+00 : f32
      %12 = vector.broadcast %cst_10 : f32 to vector<128x128xf32>
      %c0_11 = arith.constant 0 : index
      %c0_12 = arith.constant 0 : index
      %13 = vector.load %arg6[%c0_11, %c0_12] : memref<128x128xf32, #tpu.memory_space<vmem>>, vector<128x128xf32>
      tpu.vector_store %arg6[%c0_11, %c0_12], %12 {strides = array<i32>} : memref<128x128xf32, #tpu.memory_space<vmem>>, vector<128x128xf32>,
    } else {
    }
    %c0 = arith.constant 0 : index
    %c0_1 = arith.constant 0 : index
    %3 = vector.load %arg6[%c0, %c0_1] : memref<128x128xf32, #tpu.memory_space<vmem>>, vector<128x128xf32>
    %c0_2 = arith.constant 0 : index
    %c0_3 = arith.constant 0 : index
    %4 = vector.load %arg2[%c0_2, %c0_3] : memref<128x128xf32, #tpu.memory_space<vmem>>, vector<128x128xf32>
    %c0_4 = arith.constant 0 : index
    %c0_5 = arith.constant 0 : index
    %5 = vector.load %arg3[%c0_4, %c0_5] : memref<128x128xf32, #tpu.memory_space<vmem>>, vector<128x128xf32>
    %cst = arith.constant dense<0.000000e+00> : vector<128x128xf32>
    %6 = tpu.matmul %4, %5, %cst {dimension_numbers = #tpu.dot_dimension_numbers<[1], [0], [0], [1], [0, 0, 1, 1], [], []>} : vector<128x128xf32>, vector<128x128xf32>, vector<128x128xf32> -> vector<128x128xf32>
    %7 = arith.addf %3, %6 : vector<128x128xf32>
    %c0_6 = arith.constant 0 : index
    %c0_7 = arith.constant 0 : index
    %8 = vector.load %arg6[%c0_6, %c0_7] : memref<128x128xf32, #tpu.memory_space<vmem>>, vector<128x128xf32>
    tpu.vector_store %arg6[%c0_6, %c0_7], %7 {strides = array<i32>} : memref<128x128xf32, #tpu.memory_space<vmem>>, vector<128x128xf32>,
    %c0_i32_8 = arith.constant 0 : i32
    %9 = arith.cmpi eq, %arg1, %c0_i32_8 : i32
    %10 = arith.extui %9 : i1 to i32
    %c0_i32_9 = arith.constant 0 : i32
    %11 = arith.cmpi ne, %10, %c0_i32_9 : i32
    scf.if %11 {
      %c0_10 = arith.constant 0 : index
      %c0_11 = arith.constant 0 : index
      %12 = vector.load %arg6[%c0_10, %c0_11] : memref<128x128xf32, #tpu.memory_space<vmem>>, vector<128x128xf32>
      %c0_12 = arith.constant 0 : index
      %c0_13 = arith.constant 0 : index
      %13 = vector.load %arg4[%c0_12, %c0_13] : memref<1x128xf32, #tpu.memory_space<vmem>>, vector<1x128xf32>
      %14 = vector.broadcast %13 : vector<1x128xf32> to vector<128x128xf32>
      %15 = arith.addf %12, %14 : vector<128x128xf32>
      %cst_14 = arith.constant 0.000000e+00 : f32
      %16 = vector.broadcast %cst_14 : f32 to vector<128x128xf32>
      %17 = arith.maximumf %15, %16 : vector<128x128xf32>
      %c0_15 = arith.constant 0 : index
      %c0_16 = arith.constant 0 : index
      %18 = vector.load %arg5[%c0_15, %c0_16] : memref<128x128xf32, #tpu.memory_space<vmem>>, vector<128x128xf32>
      tpu.vector_store %arg5[%c0_15, %c0_16], %17 {strides = array<i32>} : memref<128x128xf32, #tpu.memory_space<vmem>>, vector<128x128xf32>,
    } else {
    }
    return
  }
  func.func @transform_0(%arg0: i32, %arg1: i32) -> (i32, i32) {
    %c0_i32 = arith.constant 0 : i32
    return %arg0, %arg1 : i32, i32
  }
  func.func @transform_1(%arg0: i32, %arg1: i32) -> (i32, i32) {
    %c0_i32 = arith.constant 0 : i32
    %c0_i32_0 = arith.constant 0 : i32
    return %arg1, %c0_i32 : i32, i32
  }
  func.func @transform_2(%arg0: i32, %arg1: i32) -> (i32, i32) {
    %c0_i32 = arith.constant 0 : i32
    %c0_i32_0 = arith.constant 0 : i32
    %c0_i32_1 = arith.constant 0 : i32
    return %c0_i32, %c0_i32_0 : i32, i32
  }
  func.func @transform_3(%arg0: i32, %arg1: i32) -> (i32, i32) {
    %c0_i32 = arith.constant 0 : i32
    %c0_i32_0 = arith.constant 0 : i32
    return %arg0, %c0_i32 : i32, i32
  }
}

</mosaic_0001>

<bundles_post_ra>
// kernel: structure_decoder.3
= control target key start
LH: loop header
LB: loop body
LE: loop exit
PB: predicated region body
PF: predicated region fallthrough
CT: control target
= control target key end

     0   :  { %s335_s1 = inlined_call_operand.vmem [shape: f32[128,128], index: 1, kind: input, shape index: {}, may-alias: {0,1}]   ;;  %s336_s0 = inlined_call_operand.vmem [shape: f32[128,128], index: 0, kind: input, shape index: {}, may-alias: {0,1}]   ;;  %s337_s2 = inlined_call_operand.vmem [shape: f32[128,128], index: 2, kind: output, shape index: {}]  }
   0x1   :  { %v42_v0 = vld [vmem:[%s335_s1 + $0x78] sm:$0xff]  ;;  %v41_v1 = vld [vmem:[%s335_s1 + $0x70] sm:$0xff]  ;;  %v40_v2 = vld [vmem:[%s335_s1 + $0x68] sm:$0xff] }
   0x2   :  { %129 = vmatpush.xpose.msra.mxu2 %v42_v0  ;;  %130 = vmatpush.xpose.msra.mxu3 %v42_v0  ;;  %v39_v3 = vld [vmem:[%s335_s1 + $0x60] sm:$0xff]  ;;  %v38_v4 = vld [vmem:[%s335_s1 + $0x58] sm:$0xff]  ;;  %v37_v5 = vld [vmem:[%s335_s1 + $0x50] sm:$0xff] }
   0x3   :  { %43 = vmatpush.xpose.msra.mxu0 %v42_v0  ;;  %128 = vmatpush.xpose.msra.mxu1 %v42_v0  ;;  %v36_v6 = vld [vmem:[%s335_s1 + $0x48] sm:$0xff]  ;;  %v35_v7 = vld [vmem:[%s335_s1 + $0x40] sm:$0xff]  ;;  %v34_v8 = vld [vmem:[%s335_s1 + $0x38] sm:$0xff] }
   0x4   :  { %v33_v9 = vld [vmem:[%s335_s1 + $0x30] sm:$0xff]  ;;  %v32_v10 = vld [vmem:[%s335_s1 + $0x28] sm:$0xff]  ;;  %v31_v11 = vld [vmem:[%s335_s1 + $0x20] sm:$0xff] }
   0x5   :  { %v30_v12 = vld [vmem:[%s335_s1 + $0x18] sm:$0xff]  ;;  %v29_v13 = vld [vmem:[%s335_s1 + $0x10] sm:$0xff]  ;;  %v28_v14 = vld [vmem:[%s335_s1 + $0x8] sm:$0xff] }
   0x6   :  { %132 = vmatpush.xpose.msra.mxu2 %v41_v1  ;;  %133 = vmatpush.xpose.msra.mxu3 %v41_v1  ;;  %v27_v15 = vld [vmem:[%s335_s1] sm:$0xff]  ;;  %v20_v20 = vld [vmem:[%s336_s0 + $0x48] sm:$0xff]  ;;  %v21_v24 = vld [vmem:[%s336_s0 + $0x50] sm:$0xff] }
   0x7   :  { %44 = vmatpush.xpose.msra.mxu0 %v41_v1  ;;  %131 = vmatpush.xpose.msra.mxu1 %v41_v1  ;;  %v19_v16 = vld [vmem:[%s336_s0 + $0x40] sm:$0xff]  ;;  %v24_v21 = vld [vmem:[%s336_s0 + $0x68] sm:$0xff]  ;;  %v25_v25 = vld [vmem:[%s336_s0 + $0x70] sm:$0xff] }
   0x8   :  { %v23_v17 = vld [vmem:[%s336_s0 + $0x60] sm:$0xff]  ;;  %v12_v22 = vld [vmem:[%s336_s0 + $0x8] sm:$0xff]  ;;  %v13_v26 = vld [vmem:[%s336_s0 + $0x10] sm:$0xff] }
   0x9   :  { %v11_v18 = vld [vmem:[%s336_s0] sm:$0xff]  ;;  %v16_v23 = vld [vmem:[%s336_s0 + $0x28] sm:$0xff]  ;;  %v17_v27 = vld [vmem:[%s336_s0 + $0x30] sm:$0xff] }
   0xa   :  { %135 = vmatpush.xpose.msra.mxu2 %v40_v2  ;;  %136 = vmatpush.xpose.msra.mxu3 %v40_v2  ;;  %v15_v19 = vld [vmem:[%s336_s0 + $0x20] sm:$0xff]  ;;  %v22_v28 = vld [vmem:[%s336_s0 + $0x58] sm:$0xff] }
   0xb   :  { %45 = vmatpush.xpose.msra.mxu0 %v40_v2  ;;  %134 = vmatpush.xpose.msra.mxu1 %v40_v2  ;;  %v26_v29 = vld [vmem:[%s336_s0 + $0x78] sm:$0xff] }
   0xc   :  { %v14_v30 = vld [vmem:[%s336_s0 + $0x18] sm:$0xff] }
   0xd   :  { %v18_v31 = vld [vmem:[%s336_s0 + $0x38] sm:$0xff] }
   0xe   :  { %138 = vmatpush.xpose.msra.mxu2 %v39_v3  ;;  %139 = vmatpush.xpose.msra.mxu3 %v39_v3 }
   0xf   :  { %46 = vmatpush.xpose.msra.mxu0 %v39_v3  ;;  %137 = vmatpush.xpose.msra.mxu1 %v39_v3 }
  0x12   :  { %141 = vmatpush.xpose.msra.mxu2 %v38_v4  ;;  %142 = vmatpush.xpose.msra.mxu3 %v38_v4 }
  0x13   :  { %47 = vmatpush.xpose.msra.mxu0 %v38_v4  ;;  %140 = vmatpush.xpose.msra.mxu1 %v38_v4 }
  0x16   :  { %144 = vmatpush.xpose.msra.mxu2 %v37_v5  ;;  %145 = vmatpush.xpose.msra.mxu3 %v37_v5 }
  0x17   :  { %48 = vmatpush.xpose.msra.mxu0 %v37_v5  ;;  %143 = vmatpush.xpose.msra.mxu1 %v37_v5 }
  0x1a   :  { %147 = vmatpush.xpose.msra.mxu2 %v36_v6  ;;  %148 = vmatpush.xpose.msra.mxu3 %v36_v6 }
  0x1b   :  { %49 = vmatpush.xpose.msra.mxu0 %v36_v6  ;;  %146 = vmatpush.xpose.msra.mxu1 %v36_v6 }
  0x1e   :  { %150 = vmatpush.xpose.msra.mxu2 %v35_v7  ;;  %151 = vmatpush.xpose.msra.mxu3 %v35_v7 }
  0x1f   :  { %50 = vmatpush.xpose.msra.mxu0 %v35_v7  ;;  %149 = vmatpush.xpose.msra.mxu1 %v35_v7 }
  0x22   :  { %153 = vmatpush.xpose.msra.mxu2 %v34_v8  ;;  %154 = vmatpush.xpose.msra.mxu3 %v34_v8 }
  0x23   :  { %51 = vmatpush.xpose.msra.mxu0 %v34_v8  ;;  %152 = vmatpush.xpose.msra.mxu1 %v34_v8 }
  0x26   :  { %156 = vmatpush.xpose.msra.mxu2 %v33_v9  ;;  %157 = vmatpush.xpose.msra.mxu3 %v33_v9 }
  0x27   :  { %52 = vmatpush.xpose.msra.mxu0 %v33_v9  ;;  %155 = vmatpush.xpose.msra.mxu1 %v33_v9 }
  0x2a   :  { %159 = vmatpush.xpose.msra.mxu2 %v32_v10  ;;  %160 = vmatpush.xpose.msra.mxu3 %v32_v10 }
  0x2b   :  { %53 = vmatpush.xpose.msra.mxu0 %v32_v10  ;;  %158 = vmatpush.xpose.msra.mxu1 %v32_v10 }
  0x2e   :  { %162 = vmatpush.xpose.msra.mxu2 %v31_v11  ;;  %163 = vmatpush.xpose.msra.mxu3 %v31_v11 }
  0x2f   :  { %54 = vmatpush.xpose.msra.mxu0 %v31_v11  ;;  %161 = vmatpush.xpose.msra.mxu1 %v31_v11 }
  0x32   :  { %165 = vmatpush.xpose.msra.mxu2 %v30_v12  ;;  %166 = vmatpush.xpose.msra.mxu3 %v30_v12 }
  0x33   :  { %55 = vmatpush.xpose.msra.mxu0 %v30_v12  ;;  %164 = vmatpush.xpose.msra.mxu1 %v30_v12 }
  0x36   :  { %168 = vmatpush.xpose.msra.mxu2 %v29_v13  ;;  %169 = vmatpush.xpose.msra.mxu3 %v29_v13 }
  0x37   :  { %56 = vmatpush.xpose.msra.mxu0 %v29_v13  ;;  %167 = vmatpush.xpose.msra.mxu1 %v29_v13 }
  0x3a   :  { %171 = vmatpush.xpose.msra.mxu2 %v28_v14  ;;  %172 = vmatpush.xpose.msra.mxu3 %v28_v14 }
  0x3b   :  { %57 = vmatpush.xpose.msra.mxu0 %v28_v14  ;;  %170 = vmatpush.xpose.msra.mxu1 %v28_v14 }
  0x3e   :  { %174 = vmatpush.xpose.msra.mxu2 %v27_v15  ;;  %175 = vmatpush.xpose.msra.mxu3 %v27_v15 }
  0x3f   :  { %58 = vmatpush.xpose.msra.mxu0 %v27_v15  ;;  %173 = vmatpush.xpose.msra.mxu1 %v27_v15 }
  0x41   :  { %83 = vmatmul.f32.vlgmr.msra.gmra.mxu2 %v19_v16  ;;  %95 = vmatmul.f32.vlgmr.msra.gmra.mxu3 %v23_v17 }
  0x42   :  { %59 = vmatmul.f32.vlgmr.msra.gmra.mxu0 %v11_v18  ;;  %71 = vmatmul.f32.vlgmr.msra.gmra.mxu1 %v15_v19 }
  0x49   :  { %86 = vmatmul.f32.gmra.mxu2 %v20_v20  ;;  %98 = vmatmul.f32.gmra.mxu3 %v24_v21 }
  0x4a   :  { %62 = vmatmul.f32.gmra.mxu0 %v12_v22  ;;  %74 = vmatmul.f32.gmra.mxu1 %v16_v23 }
  0x51   :  { %89 = vmatmul.f32.gmra.mxu2 %v21_v24  ;;  %101 = vmatmul.f32.gmra.mxu3 %v25_v25 }
  0x52   :  { %65 = vmatmul.f32.gmra.mxu0 %v13_v26  ;;  %77 = vmatmul.f32.gmra.mxu1 %v17_v27 }
  0x59   :  { %92 = vmatmul.f32.gmra.mxu2 %v22_v28  ;;  %104 = vmatmul.f32.gmra.mxu3 %v26_v29 }
  0x5a   :  { %68 = vmatmul.f32.gmra.mxu0 %v14_v30  ;;  %80 = vmatmul.f32.gmra.mxu1 %v18_v31 }
  0xbf   :  { %v60_v32 = vpop.f32.mrf.mxu0  ;;  %v72_v33 = vpop.f32.mrf.mxu1 }
  0xc0   :  { %108 = vst [vmem:[%s337_s2] sm:$0xff] %v60_v32 }
  0xc1   :  { %112 = vst [vmem:[%s337_s2 + $0x20] sm:$0xff] %v72_v33 }
  0xc4   :  { %v84_v34 = vpop.f32.mrf.mxu2  ;;  %v96_v35 = vpop.f32.mrf.mxu3 }
  0xc5   :  { %116 = vst [vmem:[%s337_s2 + $0x40] sm:$0xff] %v84_v34 }
  0xc6   :  { %120 = vst [vmem:[%s337_s2 + $0x60] sm:$0xff] %v96_v35 }
  0xc7   :  { %v63_v36 = vpop.f32.mrf.mxu0  ;;  %v75_v37 = vpop.f32.mrf.mxu1 }
  0xc8   :  { %109 = vst [vmem:[%s337_s2 + $0x8] sm:$0xff] %v63_v36 }
  0xc9   :  { %113 = vst [vmem:[%s337_s2 + $0x28] sm:$0xff] %v75_v37 }
  0xcc   :  { %v87_v38 = vpop.f32.mrf.mxu2  ;;  %v99_v39 = vpop.f32.mrf.mxu3 }
  0xcd   :  { %117 = vst [vmem:[%s337_s2 + $0x48] sm:$0xff] %v87_v38 }
  0xce   :  { %121 = vst [vmem:[%s337_s2 + $0x68] sm:$0xff] %v99_v39 }
  0xcf   :  { %v66_v40 = vpop.f32.mrf.mxu0  ;;  %v78_v41 = vpop.f32.mrf.mxu1 }
  0xd0   :  { %110 = vst [vmem:[%s337_s2 + $0x10] sm:$0xff] %v66_v40 }
  0xd1   :  { %114 = vst [vmem:[%s337_s2 + $0x30] sm:$0xff] %v78_v41 }
  0xd4   :  { %v90_v42 = vpop.f32.mrf.mxu2  ;;  %v102_v43 = vpop.f32.mrf.mxu3 }
  0xd5   :  { %118 = vst [vmem:[%s337_s2 + $0x50] sm:$0xff] %v90_v42 }
  0xd6   :  { %122 = vst [vmem:[%s337_s2 + $0x70] sm:$0xff] %v102_v43 }
  0xd7   :  { %v69_v44 = vpop.f32.mrf.mxu0  ;;  %v81_v45 = vpop.f32.mrf.mxu1 }
  0xd8   :  { %111 = vst [vmem:[%s337_s2 + $0x18] sm:$0xff] %v69_v44 }
  0xd9   :  { %115 = vst [vmem:[%s337_s2 + $0x38] sm:$0xff] %v81_v45 }
  0xdc   :  { %v93_v46 = vpop.f32.mrf.mxu2  ;;  %v105_v47 = vpop.f32.mrf.mxu3 }
  0xdd   :  { %119 = vst [vmem:[%s337_s2 + $0x58] sm:$0xff] %v93_v46 }
  0xde   :  { %123 = vst [vmem:[%s337_s2 + $0x78] sm:$0xff] %v105_v47 }

// kernel: structure_decoder.2
= control target key start
LH: loop header
LB: loop body
LE: loop exit
PB: predicated region body
PF: predicated region fallthrough
CT: control target
= control target key end

     0   :  { %s470_s1 = inlined_call_operand.vmem [shape: f32[128,128], index: 1, kind: input, shape index: {}]   ;;  %s471_s2 = inlined_call_operand.vmem [shape: f32[1,128], index: 2, kind: input, shape index: {}]   ;;  %s472_s0 = inlined_call_operand.vmem [shape: f32[128,128], index: 0, kind: input, shape index: {}]   ;;  %s473_s3 = inlined_call_operand.vmem [shape: f32[128,128], index: 3, kind: output, shape index: {}]  }
   0x1   :  { %v81_v0 = vld [vmem:[%s470_s1 + $0x78] sm:$0xff]  ;;  %v80_v1 = vld [vmem:[%s470_s1 + $0x70] sm:$0xff]  ;;  %v79_v2 = vld [vmem:[%s470_s1 + $0x68] sm:$0xff] }
   0x2   :  { %255 = vmatpush.msra.mxu2 %v81_v0  ;;  %256 = vmatpush.msra.mxu3 %v81_v0  ;;  %v78_v3 = vld [vmem:[%s470_s1 + $0x60] sm:$0xff]  ;;  %v77_v4 = vld [vmem:[%s470_s1 + $0x58] sm:$0xff]  ;;  %v76_v5 = vld [vmem:[%s470_s1 + $0x50] sm:$0xff] }
   0x3   :  { %82 = vmatpush.msra.mxu0 %v81_v0  ;;  %254 = vmatpush.msra.mxu1 %v81_v0  ;;  %v75_v6 = vld [vmem:[%s470_s1 + $0x48] sm:$0xff]  ;;  %v74_v7 = vld [vmem:[%s470_s1 + $0x40] sm:$0xff]  ;;  %v73_v8 = vld [vmem:[%s470_s1 + $0x38] sm:$0xff] }
   0x4   :  { %258 = vmatpush.msra.mxu2 %v80_v1  ;;  %259 = vmatpush.msra.mxu3 %v80_v1  ;;  %v72_v9 = vld [vmem:[%s470_s1 + $0x30] sm:$0xff]  ;;  %v71_v10 = vld [vmem:[%s470_s1 + $0x28] sm:$0xff]  ;;  %v70_v11 = vld [vmem:[%s470_s1 + $0x20] sm:$0xff] }
   0x5   :  { %83 = vmatpush.msra.mxu0 %v80_v1  ;;  %257 = vmatpush.msra.mxu1 %v80_v1  ;;  %v69_v12 = vld [vmem:[%s470_s1 + $0x18] sm:$0xff]  ;;  %v68_v13 = vld [vmem:[%s470_s1 + $0x10] sm:$0xff]  ;;  %v67_v14 = vld [vmem:[%s470_s1 + $0x8] sm:$0xff] }
   0x6   :  { %261 = vmatpush.msra.mxu2 %v79_v2  ;;  %262 = vmatpush.msra.mxu3 %v79_v2  ;;  %v66_v15 = vld [vmem:[%s470_s1] sm:$0xff]  ;;  %v59_v20 = vld [vmem:[%s472_s0 + $0x48] sm:$0xff]  ;;  %v60_v24 = vld [vmem:[%s472_s0 + $0x50] sm:$0xff] }
   0x7   :  { %84 = vmatpush.msra.mxu0 %v79_v2  ;;  %260 = vmatpush.msra.mxu1 %v79_v2  ;;  %v58_v16 = vld [vmem:[%s472_s0 + $0x40] sm:$0xff]  ;;  %v63_v21 = vld [vmem:[%s472_s0 + $0x68] sm:$0xff]  ;;  %v64_v25 = vld [vmem:[%s472_s0 + $0x70] sm:$0xff] }
   0x8   :  { %264 = vmatpush.msra.mxu2 %v78_v3  ;;  %265 = vmatpush.msra.mxu3 %v78_v3  ;;  %v62_v17 = vld [vmem:[%s472_s0 + $0x60] sm:$0xff]  ;;  %v51_v22 = vld [vmem:[%s472_s0 + $0x8] sm:$0xff]  ;;  %v52_v26 = vld [vmem:[%s472_s0 + $0x10] sm:$0xff] }
   0x9   :  { %85 = vmatpush.msra.mxu0 %v78_v3  ;;  %263 = vmatpush.msra.mxu1 %v78_v3  ;;  %v50_v18 = vld [vmem:[%s472_s0] sm:$0xff]  ;;  %v55_v23 = vld [vmem:[%s472_s0 + $0x28] sm:$0xff]  ;;  %v56_v27 = vld [vmem:[%s472_s0 + $0x30] sm:$0xff] }
   0xa   :  { %267 = vmatpush.msra.mxu2 %v77_v4  ;;  %268 = vmatpush.msra.mxu3 %v77_v4  ;;  %v54_v19 = vld [vmem:[%s472_s0 + $0x20] sm:$0xff]  ;;  %v61_v28 = vld [vmem:[%s472_s0 + $0x58] sm:$0xff] }
   0xb   :  { %86 = vmatpush.msra.mxu0 %v77_v4  ;;  %266 = vmatpush.msra.mxu1 %v77_v4  ;;  %v65_v29 = vld [vmem:[%s472_s0 + $0x78] sm:$0xff]  ;;  %v302_v32 = vld [vmem:[%s471_s2] ss:$0 sm:$0xff] }
   0xc   :  { %270 = vmatpush.msra.mxu2 %v76_v5  ;;  %271 = vmatpush.msra.mxu3 %v76_v5  ;;  %v53_v30 = vld [vmem:[%s472_s0 + $0x18] sm:$0xff] }
   0xd   :  { %87 = vmatpush.msra.mxu0 %v76_v5  ;;  %269 = vmatpush.msra.mxu1 %v76_v5  ;;  %v57_v31 = vld [vmem:[%s472_s0 + $0x38] sm:$0xff] }
   0xe   :  { %273 = vmatpush.msra.mxu2 %v75_v6  ;;  %274 = vmatpush.msra.mxu3 %v75_v6 }
   0xf   :  { %88 = vmatpush.msra.mxu0 %v75_v6  ;;  %272 = vmatpush.msra.mxu1 %v75_v6 }
  0x10   :  { %276 = vmatpush.msra.mxu2 %v74_v7  ;;  %277 = vmatpush.msra.mxu3 %v74_v7 }
  0x11   :  { %89 = vmatpush.msra.mxu0 %v74_v7  ;;  %275 = vmatpush.msra.mxu1 %v74_v7 }
  0x12   :  { %279 = vmatpush.msra.mxu2 %v73_v8  ;;  %280 = vmatpush.msra.mxu3 %v73_v8 }
  0x13   :  { %90 = vmatpush.msra.mxu0 %v73_v8  ;;  %278 = vmatpush.msra.mxu1 %v73_v8 }
  0x14   :  { %282 = vmatpush.msra.mxu2 %v72_v9  ;;  %283 = vmatpush.msra.mxu3 %v72_v9 }
  0x15   :  { %91 = vmatpush.msra.mxu0 %v72_v9  ;;  %281 = vmatpush.msra.mxu1 %v72_v9 }
  0x16   :  { %285 = vmatpush.msra.mxu2 %v71_v10  ;;  %286 = vmatpush.msra.mxu3 %v71_v10 }
  0x17   :  { %92 = vmatpush.msra.mxu0 %v71_v10  ;;  %284 = vmatpush.msra.mxu1 %v71_v10 }
  0x18   :  { %288 = vmatpush.msra.mxu2 %v70_v11  ;;  %289 = vmatpush.msra.mxu3 %v70_v11 }
  0x19   :  { %93 = vmatpush.msra.mxu0 %v70_v11  ;;  %287 = vmatpush.msra.mxu1 %v70_v11 }
  0x1a   :  { %291 = vmatpush.msra.mxu2 %v69_v12  ;;  %292 = vmatpush.msra.mxu3 %v69_v12 }
  0x1b   :  { %94 = vmatpush.msra.mxu0 %v69_v12  ;;  %290 = vmatpush.msra.mxu1 %v69_v12 }
  0x1c   :  { %294 = vmatpush.msra.mxu2 %v68_v13  ;;  %295 = vmatpush.msra.mxu3 %v68_v13 }
  0x1d   :  { %95 = vmatpush.msra.mxu0 %v68_v13  ;;  %293 = vmatpush.msra.mxu1 %v68_v13 }
  0x1e   :  { %297 = vmatpush.msra.mxu2 %v67_v14  ;;  %298 = vmatpush.msra.mxu3 %v67_v14 }
  0x1f   :  { %96 = vmatpush.msra.mxu0 %v67_v14  ;;  %296 = vmatpush.msra.mxu1 %v67_v14 }
  0x20   :  { %300 = vmatpush.msra.mxu2 %v66_v15  ;;  %301 = vmatpush.msra.mxu3 %v66_v15 }
  0x21   :  { %122 = vmatmul.f32.vlgmr.msra.gmra.mxu2 %v58_v16  ;;  %134 = vmatmul.f32.vlgmr.msra.gmra.mxu3 %v62_v17 }
  0x22   :  { %97 = vmatpush.msra.mxu0 %v66_v15  ;;  %299 = vmatpush.msra.mxu1 %v66_v15 }
  0x23   :  { %98 = vmatmul.f32.vlgmr.msra.gmra.mxu0 %v50_v18  ;;  %110 = vmatmul.f32.vlgmr.msra.gmra.mxu1 %v54_v19 }
  0x29   :  { %125 = vmatmul.f32.gmra.mxu2 %v59_v20  ;;  %137 = vmatmul.f32.gmra.mxu3 %v63_v21 }
  0x2b   :  { %101 = vmatmul.f32.gmra.mxu0 %v51_v22  ;;  %113 = vmatmul.f32.gmra.mxu1 %v55_v23 }
  0x31   :  { %128 = vmatmul.f32.gmra.mxu2 %v60_v24  ;;  %140 = vmatmul.f32.gmra.mxu3 %v64_v25 }
  0x33   :  { %104 = vmatmul.f32.gmra.mxu0 %v52_v26  ;;  %116 = vmatmul.f32.gmra.mxu1 %v56_v27 }
  0x39   :  { %131 = vmatmul.f32.gmra.mxu2 %v61_v28  ;;  %143 = vmatmul.f32.gmra.mxu3 %v65_v29 }
  0x3b   :  { %107 = vmatmul.f32.gmra.mxu0 %v53_v30  ;;  %119 = vmatmul.f32.gmra.mxu1 %v57_v31 }
  0xa0   :  { %v99_v33 = vpop.f32.mrf.mxu0  ;;  %v111_v34 = vpop.f32.mrf.mxu1 }
  0xa1   :  { %v202_v35 = vadd.f32 %v302_v32, %v99_v33  ;;  %v206_v36 = vadd.f32 %v302_v32, %v111_v34 }
  0xa3   :  { %v218_v37 = vmax.f32 %v202_v35, 0.0  ;;  %v222_v38 = vmax.f32 %v206_v36, 0.0 }
  0xa4   :  { %v123_v39 = vpop.f32.mrf.mxu2  ;;  %v135_v40 = vpop.f32.mrf.mxu3 }
  0xa5   :  { %234 = vst [vmem:[%s473_s3] sm:$0xff] %v218_v37  ;;  %v210_v41 = vadd.f32 %v302_v32, %v123_v39  ;;  %v214_v42 = vadd.f32 %v302_v32, %v135_v40 }
  0xa6   :  { %238 = vst [vmem:[%s473_s3 + $0x20] sm:$0xff] %v222_v38 }
  0xa7   :  { %v226_v43 = vmax.f32 %v210_v41, 0.0  ;;  %v230_v44 = vmax.f32 %v214_v42, 0.0 }
  0xa8   :  { %v102_v45 = vpop.f32.mrf.mxu0  ;;  %v114_v46 = vpop.f32.mrf.mxu1 }
  0xa9   :  { %242 = vst [vmem:[%s473_s3 + $0x40] sm:$0xff] %v226_v43  ;;  %v203_v47 = vadd.f32 %v302_v32, %v102_v45  ;;  %v207_v48 = vadd.f32 %v302_v32, %v114_v46 }
  0xaa   :  { %246 = vst [vmem:[%s473_s3 + $0x60] sm:$0xff] %v230_v44 }
  0xab   :  { %v219_v49 = vmax.f32 %v203_v47, 0.0  ;;  %v223_v50 = vmax.f32 %v207_v48, 0.0 }
  0xac   :  { %v126_v51 = vpop.f32.mrf.mxu2  ;;  %v138_v52 = vpop.f32.mrf.mxu3 }
  0xad   :  { %235 = vst [vmem:[%s473_s3 + $0x8] sm:$0xff] %v219_v49  ;;  %v211_v53 = vadd.f32 %v302_v32, %v126_v51  ;;  %v215_v54 = vadd.f32 %v302_v32, %v138_v52 }
  0xae   :  { %239 = vst [vmem:[%s473_s3 + $0x28] sm:$0xff] %v223_v50 }
  0xaf   :  { %v227_v55 = vmax.f32 %v211_v53, 0.0  ;;  %v231_v56 = vmax.f32 %v215_v54, 0.0 }
  0xb0   :  { %v105_v57 = vpop.f32.mrf.mxu0  ;;  %v117_v58 = vpop.f32.mrf.mxu1 }
  0xb1   :  { %243 = vst [vmem:[%s473_s3 + $0x48] sm:$0xff] %v227_v55  ;;  %v204_v59 = vadd.f32 %v302_v32, %v105_v57  ;;  %v208_v60 = vadd.f32 %v302_v32, %v117_v58 }
  0xb2   :  { %247 = vst [vmem:[%s473_s3 + $0x68] sm:$0xff] %v231_v56 }
  0xb3   :  { %v220_v61 = vmax.f32 %v204_v59, 0.0  ;;  %v224_v62 = vmax.f32 %v208_v60, 0.0 }
  0xb4   :  { %v129_v63 = vpop.f32.mrf.mxu2  ;;  %v141_v0 = vpop.f32.mrf.mxu3 }
  0xb5   :  { %236 = vst [vmem:[%s473_s3 + $0x10] sm:$0xff] %v220_v61  ;;  %v212_v1 = vadd.f32 %v302_v32, %v129_v63  ;;  %v216_v2 = vadd.f32 %v302_v32, %v141_v0 }
  0xb6   :  { %240 = vst [vmem:[%s473_s3 + $0x30] sm:$0xff] %v224_v62 }
  0xb7   :  { %v228_v3 = vmax.f32 %v212_v1, 0.0  ;;  %v232_v4 = vmax.f32 %v216_v2, 0.0 }
  0xb8   :  { %v108_v5 = vpop.f32.mrf.mxu0  ;;  %v120_v6 = vpop.f32.mrf.mxu1 }
  0xb9   :  { %244 = vst [vmem:[%s473_s3 + $0x50] sm:$0xff] %v228_v3  ;;  %v205_v7 = vadd.f32 %v302_v32, %v108_v5  ;;  %v209_v8 = vadd.f32 %v302_v32, %v120_v6 }
  0xba   :  { %248 = vst [vmem:[%s473_s3 + $0x70] sm:$0xff] %v232_v4 }
  0xbb   :  { %v221_v9 = vmax.f32 %v205_v7, 0.0  ;;  %v225_v10 = vmax.f32 %v209_v8, 0.0 }
  0xbc   :  { %v132_v11 = vpop.f32.mrf.mxu2  ;;  %v144_v12 = vpop.f32.mrf.mxu3 }
  0xbd   :  { %237 = vst [vmem:[%s473_s3 + $0x18] sm:$0xff] %v221_v9  ;;  %v213_v13 = vadd.f32 %v302_v32, %v132_v11  ;;  %v217_v14 = vadd.f32 %v302_v32, %v144_v12 }
  0xbe   :  { %241 = vst [vmem:[%s473_s3 + $0x38] sm:$0xff] %v225_v10 }
  0xbf   :  { %v229_v15 = vmax.f32 %v213_v13, 0.0  ;;  %v233_v16 = vmax.f32 %v217_v14, 0.0 }
  0xc1   :  { %245 = vst [vmem:[%s473_s3 + $0x58] sm:$0xff] %v229_v15 }
  0xc2   :  { %249 = vst [vmem:[%s473_s3 + $0x78] sm:$0xff] %v233_v16 }

</bundles_post_ra>
